<compile_context>
chip_gen: v5e
topology: v5e:2x2
jax: 0.10.0
libtpu: 0.0.40
codegen_flags: <defaults>
</compile_context>

<pallas_src>
import functools

import jax
import jax.numpy as jnp
from jax import lax
from jax.experimental import pallas as pl
from jax.experimental.pallas import tpu as pltpu

_LANE = 128     # f32/bf16 lane width  (last-dim alignment)
_SUBLANE = 8    # f32 sublane width    (second-to-last alignment)


def _round_up(x, m):
    return ((x + m - 1) // m) * m


def _pick_row_tile(n_rows, requested):
    """Shrink the requested row tile so the grid keeps >= 4 steps (2 per
    TensorCore on v7x); for tiny inputs drop to a single sublane-aligned
    block."""
    tile = max(_SUBLANE, _round_up(requested, _SUBLANE))
    while tile > _SUBLANE and (n_rows + tile - 1) // tile < 4:
        tile //= 2
    if (n_rows + tile - 1) // tile < 2:
        tile = _round_up(n_rows, _SUBLANE)
    return max(tile, _SUBLANE)


def _vmem_limit_bytes():
    """Generation-aware VMEM budget: ~75% of physical, capped at 100 MiB
    (v5e/v6e: ~96 MiB, v7x: ~48 MiB)."""
    try:
        cap = int(pltpu.get_tpu_info().vmem_capacity_bytes)
    except Exception:
        cap = 64 * 1024 * 1024  # conservative (v7x-sized) fallback
    return min((cap * 3) // 4, 100 * 1024 * 1024)


def _fused_mlp_kernel(n_hidden, compute_dtype, x_ref, w0_ref, b0_ref, *rest):
    """Push one row tile of x through the entire MLP; weights stay in VMEM."""
    if n_hidden > 0:
        wh_ref, bh_ref, wo_ref, bo_ref, o_ref, h_ref = rest
    else:
        wo_ref, bo_ref, o_ref, h_ref = rest

    # Layer 0: h = relu(x @ W0 + b0); f32 accumulation on the MXU.
    h0 = jnp.dot(x_ref[...].astype(compute_dtype), w0_ref[...],
                 preferred_element_type=jnp.float32)
    h_ref[...] = jnp.maximum(h0 + b0_ref[...].astype(jnp.float32), 0.0)

    # Hidden residual layers.  The running activation h lives in a VMEM
    # scratch accumulator so live ranges stay bounded regardless of depth.
    # TODO(synk): dropout is implemented as identity (eval/inference mode).
    if n_hidden > 0:
        def _layer(l, h):
            y = jnp.dot(h.astype(compute_dtype), wh_ref[l],
                        preferred_element_type=jnp.float32)
            y = jnp.maximum(y + bh_ref[l].astype(jnp.float32), 0.0)
            return y + h  # residual from the live activation (no HBM re-read)

        if n_hidden <= 4:
            for l in range(n_hidden):           # few layers: static unroll
                h_ref[...] = _layer(l, h_ref[...])
        else:                                   # deep: bounded-live-range loop
            def _body(l, carry):
                h_ref[...] = _layer(l, h_ref[...])
                return carry
            lax.fori_loop(0, n_hidden, _body, 0)

    # Output layer with residual.
    h = h_ref[...]
    y = jnp.dot(h.astype(compute_dtype), wo_ref[...],
                preferred_element_type=jnp.float32)
    y = jnp.maximum(y + bo_ref[...].astype(jnp.float32), 0.0)
    o_ref[...] = (y + h).astype(o_ref.dtype)


def _forward(x, *params, n_hidden, in_dim, out_dim, in_p, hid_p, out_p,
             compute_dtype, row_tile, out_dtype, single_buffer_weights):
    n = x.shape[0]
    tile = _pick_row_tile(n, row_tile)
    n_p = _round_up(n, tile)
    odt = jnp.dtype(x.dtype if out_dtype is None else out_dtype)

    # Only x is padded per call; weights were padded/stacked/cast at init.
    x_p = jnp.pad(x.astype(compute_dtype), ((0, n_p - n), (0, in_p - in_dim)))

    # Constant-index weight blocks: DMA'd once, single-buffered (no double
    # buffering needed since their block index never changes).
    wmode = pl.Buffered(1) if single_buffer_weights else None

    def _wspec(shape):
        zeros = (0,) * len(shape)
        return pl.BlockSpec(shape, lambda i: zeros, pipeline_mode=wmode)

    in_specs = [
        pl.BlockSpec((tile, in_p), lambda i: (i, 0)),   # x: row tile, pipelined
        _wspec((in_p, hid_p)),                          # W0
        _wspec((1, hid_p)),                             # b0
    ]
    if n_hidden > 0:
        in_specs += [
            _wspec((n_hidden, hid_p, hid_p)),           # stacked hidden W
            _wspec((n_hidden, 1, hid_p)),               # stacked hidden b
        ]
    in_specs += [
        _wspec((hid_p, out_p)),                         # W_out
        _wspec((1, out_p)),                             # b_out
    ]

    flops = 2 * n_p * (in_p * hid_p + n_hidden * hid_p * hid_p + hid_p * out_p)
    weight_bytes = sum(int(p.size) * p.dtype.itemsize for p in params)
    bytes_accessed = (int(x_p.size) * x_p.dtype.itemsize + weight_bytes
                      + n_p * out_p * odt.itemsize)

    out = pl.pallas_call(
        functools.partial(_fused_mlp_kernel, n_hidden, compute_dtype),
        out_shape=jax.ShapeDtypeStruct((n_p, out_p), odt),
        grid=(n_p // tile,),
        in_specs=in_specs,
        out_specs=pl.BlockSpec((tile, out_p), lambda i: (i, 0)),
        scratch_shapes=[pltpu.VMEM((tile, hid_p), jnp.float32)],
        compiler_params=pltpu.CompilerParams(
            dimension_semantics=("parallel",),      # v7x: shard row tiles over TCs
            vmem_limit_bytes=_vmem_limit_bytes(),   # generation-aware budget
        ),
        cost_estimate=pl.CostEstimate(
            flops=flops, transcendentals=0, bytes_accessed=bytes_accessed),
    )(x_p, *params)

    return out[:n, :out_dim]


class ResidualMLPPallas:
    """Fused ResidualMLP forward (PyTorch eval-mode semantics).

    Parameters are padded to lane-dense shapes, stacked, and cast to the
    compute dtype ONCE at construction; the per-call path only pads x and
    launches a single pallas_call gridded over row tiles."""

    def __init__(self, layers, output_layer, *, compute_dtype=jnp.bfloat16,
                 row_tile=512, out_dtype=None, single_buffer_weights=True):
        in_dim, hid = layers[0][0].shape
        out_dim = output_layer[0].shape[1]
        n_hidden = len(layers) - 1

        # Same implicit requirement as the PyTorch module (final residual add).
        assert out_dim == hid, "out_dim must equal hidden_dim for the final residual"
        for (w, _) in layers[1:]:
            assert w.shape == (hid, hid)

        in_p = _round_up(in_dim, _LANE)
        hid_p = _round_up(hid, _LANE)
        out_p = hid_p

        w0 = jnp.pad(layers[0][0],
                     ((0, in_p - in_dim), (0, hid_p - hid))).astype(compute_dtype)
        b0 = jnp.pad(layers[0][1], ((0, 0), (0, hid_p - hid))).astype(jnp.float32)
        wo = jnp.pad(output_layer[0],
                     ((0, hid_p - hid), (0, out_p - out_dim))).astype(compute_dtype)
        bo = jnp.pad(output_layer[1],
                     ((0, 0), (0, out_p - out_dim))).astype(jnp.float32)

        params = [w0, b0]
        if n_hidden > 0:
            wh = jnp.stack([jnp.pad(w, ((0, hid_p - hid), (0, hid_p - hid)))
                            for (w, _) in layers[1:]]).astype(compute_dtype)
            bh = jnp.stack([jnp.pad(b, ((0, 0), (0, hid_p - hid)))
                            for (_, b) in layers[1:]]).astype(jnp.float32)
            params += [wh, bh]
        params += [wo, bo]
        self._params = tuple(params)

        self._fwd = jax.jit(functools.partial(
            _forward, n_hidden=n_hidden, in_dim=in_dim, out_dim=out_dim,
            in_p=in_p, hid_p=hid_p, out_p=out_p,
            compute_dtype=compute_dtype, row_tile=row_tile, out_dtype=out_dtype,
            single_buffer_weights=single_buffer_weights))

    def __call__(self, x, adj_t=None):
        # adj_t is unused by the PyTorch forward as well.
        return self._fwd(x, *self._params)


def init_linear_params(key, in_dim, out_dim, dtype=jnp.float32):
    """Deterministic init mimicking torch.nn.Linear (uniform +-1/sqrt(fan_in)).
    Weight is returned already transposed to (in_dim, out_dim)."""
    kw, kb = jax.random.split(key)
    bound = 1.0 / jnp.sqrt(jnp.array(in_dim, dtype))
    w_t = jax.random.uniform(kw, (in_dim, out_dim), dtype, -bound, bound)
    b = jax.random.uniform(kb, (1, out_dim), dtype, -bound, bound)
    return w_t, b


def make_residual_mlp_params(key, in_dim, hidden_dim, out_dim, n_layers):
    keys = jax.random.split(key, n_layers)
    layers = [init_linear_params(keys[0], in_dim, hidden_dim)]
    for i in range(n_layers - 2):
        layers.append(init_linear_params(keys[1 + i], hidden_dim, hidden_dim))
    output_layer = init_linear_params(keys[-1], hidden_dim, out_dim)
    return layers, output_layer


def _build_and_run(x, layers, output_layer, **kwargs):
    """Prefer single-buffered resident weights; fall back to default double
    buffering if this JAX build rejects pipeline_mode=pl.Buffered(1)."""
    try:
        mlp = ResidualMLPPallas(layers, output_layer,
                                single_buffer_weights=True, **kwargs)
        out = mlp(x)
        jax.block_until_ready(out)
        return out
    except Exception:
        mlp = ResidualMLPPallas(layers, output_layer,
                                single_buffer_weights=False, **kwargs)
        out = mlp(x)
        jax.block_until_ready(out)
        return out


if __name__ == "__main__":
    key = jax.random.PRNGKey(0)
    k_x, k_p = jax.random.split(key)

    # Small demo shapes. hidden/out = 128 (lane-dense); in_dim = 96 and N = 200
    # exercise the zero-padding path and the row-tile auto-shrink.
    N, IN_DIM, HIDDEN, OUT_DIM, N_LAYERS = 200, 96, 128, 128, 4

    x = jax.random.normal(k_x, (N, IN_DIM), jnp.float32)
    layers, output_layer = make_residual_mlp_params(
        k_p, IN_DIM, HIDDEN, OUT_DIM, N_LAYERS
    )

    # Pure-JAX reference (PyTorch eval-mode semantics), f32.
    def ref_forward(x, layers, output_layer):
        for i, (w_t, b) in enumerate(layers):
            if i == 0:
                x = jax.nn.relu(x @ w_t + b)
            else:
                identity = x
                x = jax.nn.relu(x @ w_t + b)
                x = x + identity
        w_t, b = output_layer
        identity = x
        x = jax.nn.relu(x @ w_t + b)
        x = x + identity
        return x

    ref = ref_forward(x, layers, output_layer)

    # 1) f32 compute path: tight correctness check.
    out_f32 = _build_and_run(x, layers, output_layer,
                             compute_dtype=jnp.float32, out_dtype=jnp.float32)
    assert out_f32.shape == (N, OUT_DIM)
    assert jnp.allclose(out_f32, ref, atol=1e-4, rtol=1e-4)

    # 2) bf16 compute path (default; f32 accumulation / bias / residual),
    #    bf16 output store: looser tolerance against the f32 reference.
    out_bf16 = _build_and_run(x, layers, output_layer,
                              compute_dtype=jnp.bfloat16, out_dtype=jnp.bfloat16)
    assert out_bf16.shape == (N, OUT_DIM)
    assert out_bf16.dtype == jnp.bfloat16
    assert jnp.allclose(out_bf16.astype(jnp.float32), ref, atol=5e-1, rtol=5e-2)

    print("KERNEL_OK")
</pallas_src>

<mosaic_0001>
module attributes {stable_mosaic.version = 11 : i64} {
  func.func @_fused_mlp_kernel(%arg0: i32, %arg1: memref<64x128xf32, #tpu.memory_space<vmem>>, %arg2: memref<128x128xf32, #tpu.memory_space<vmem>>, %arg3: memref<1x128xf32, #tpu.memory_space<vmem>>, %arg4: memref<2x128x128xf32, #tpu.memory_space<vmem>>, %arg5: memref<2x1x128xf32, #tpu.memory_space<vmem>>, %arg6: memref<128x128xf32, #tpu.memory_space<vmem>>, %arg7: memref<1x128xf32, #tpu.memory_space<vmem>>, %arg8: memref<64x128xf32, #tpu.memory_space<vmem>>, %arg9: memref<64x128xf32, #tpu.memory_space<vmem>>) attributes {dimension_semantics = [#tpu.dimension_semantics<parallel>], iteration_bounds = array<i64: 4>, scalar_prefetch = 0 : i64, scratch_operands = 1 : i64, tpu.core_type = #tpu.core_type<tc>, window_params = [{transform_indices = @transform_0, window_bounds = array<i64: 64, 128>}, {pipeline_mode = #tpu.pipeline_mode<synchronous>, transform_indices = @transform_1, window_bounds = array<i64: 128, 128>}, {pipeline_mode = #tpu.pipeline_mode<synchronous>, transform_indices = @transform_2, window_bounds = array<i64: 1, 128>}, {pipeline_mode = #tpu.pipeline_mode<synchronous>, transform_indices = @transform_3, window_bounds = array<i64: 2, 128, 128>}, {pipeline_mode = #tpu.pipeline_mode<synchronous>, transform_indices = @transform_4, window_bounds = array<i64: 2, 1, 128>}, {pipeline_mode = #tpu.pipeline_mode<synchronous>, transform_indices = @transform_5, window_bounds = array<i64: 128, 128>}, {pipeline_mode = #tpu.pipeline_mode<synchronous>, transform_indices = @transform_6, window_bounds = array<i64: 1, 128>}, {transform_indices = @transform_7, window_bounds = array<i64: 64, 128>}]} {
    %c0 = arith.constant 0 : index
    %c0_0 = arith.constant 0 : index
    %0 = vector.load %arg1[%c0, %c0_0] : memref<64x128xf32, #tpu.memory_space<vmem>>, vector<64x128xf32>
    %c0_1 = arith.constant 0 : index
    %c0_2 = arith.constant 0 : index
    %1 = vector.load %arg2[%c0_1, %c0_2] : memref<128x128xf32, #tpu.memory_space<vmem>>, vector<128x128xf32>
    %cst = arith.constant dense<0.000000e+00> : vector<64x128xf32>
    %2 = tpu.matmul %0, %1, %cst {dimension_numbers = #tpu.dot_dimension_numbers<[1], [0], [0], [1], [0, 0, 1, 1], [], []>} : vector<64x128xf32>, vector<128x128xf32>, vector<64x128xf32> -> vector<64x128xf32>
    %c0_3 = arith.constant 0 : index
    %c0_4 = arith.constant 0 : index
    %3 = vector.load %arg3[%c0_3, %c0_4] : memref<1x128xf32, #tpu.memory_space<vmem>>, vector<1x128xf32>
    %4 = vector.broadcast %3 : vector<1x128xf32> to vector<64x128xf32>
    %5 = arith.addf %2, %4 : vector<64x128xf32>
    %cst_5 = arith.constant 0.000000e+00 : f32
    %6 = vector.broadcast %cst_5 : f32 to vector<64x128xf32>
    %7 = arith.maximumf %5, %6 : vector<64x128xf32>
    %c0_6 = arith.constant 0 : index
    %c0_7 = arith.constant 0 : index
    %8 = vector.load %arg9[%c0_6, %c0_7] : memref<64x128xf32, #tpu.memory_space<vmem>>, vector<64x128xf32>
    tpu.vector_store %arg9[%c0_6, %c0_7], %7 {strides = array<i32>} : memref<64x128xf32, #tpu.memory_space<vmem>>, vector<64x128xf32>,
    %c0_8 = arith.constant 0 : index
    %c0_9 = arith.constant 0 : index
    %9 = vector.load %arg9[%c0_8, %c0_9] : memref<64x128xf32, #tpu.memory_space<vmem>>, vector<64x128xf32>
    %c0_10 = arith.constant 0 : index
    %c0_11 = arith.constant 0 : index
    %c0_12 = arith.constant 0 : index
    %10 = vector.load %arg4[%c0_10, %c0_11, %c0_12] : memref<2x128x128xf32, #tpu.memory_space<vmem>>, vector<1x128x128xf32>
    %11 = vector.shape_cast %10 : vector<1x128x128xf32> to vector<128x128xf32>
    %cst_13 = arith.constant dense<0.000000e+00> : vector<64x128xf32>
    %12 = tpu.matmul %9, %11, %cst_13 {dimension_numbers = #tpu.dot_dimension_numbers<[1], [0], [0], [1], [0, 0, 1, 1], [], []>} : vector<64x128xf32>, vector<128x128xf32>, vector<64x128xf32> -> vector<64x128xf32>
    %c0_14 = arith.constant 0 : index
    %c0_15 = arith.constant 0 : index
    %c0_16 = arith.constant 0 : index
    %13 = vector.load %arg5[%c0_14, %c0_15, %c0_16] : memref<2x1x128xf32, #tpu.memory_space<vmem>>, vector<1x1x128xf32>
    %14 = vector.shape_cast %13 : vector<1x1x128xf32> to vector<1x128xf32>
    %15 = vector.broadcast %14 : vector<1x128xf32> to vector<64x128xf32>
    %16 = arith.addf %12, %15 : vector<64x128xf32>
    %cst_17 = arith.constant 0.000000e+00 : f32
    %17 = vector.broadcast %cst_17 : f32 to vector<64x128xf32>
    %18 = arith.maximumf %16, %17 : vector<64x128xf32>
    %19 = arith.addf %18, %9 : vector<64x128xf32>
    %c0_18 = arith.constant 0 : index
    %c0_19 = arith.constant 0 : index
    %20 = vector.load %arg9[%c0_18, %c0_19] : memref<64x128xf32, #tpu.memory_space<vmem>>, vector<64x128xf32>
    tpu.vector_store %arg9[%c0_18, %c0_19], %19 {strides = array<i32>} : memref<64x128xf32, #tpu.memory_space<vmem>>, vector<64x128xf32>,
    %c0_20 = arith.constant 0 : index
    %c0_21 = arith.constant 0 : index
    %21 = vector.load %arg9[%c0_20, %c0_21] : memref<64x128xf32, #tpu.memory_space<vmem>>, vector<64x128xf32>
    %c1 = arith.constant 1 : index
    %c0_22 = arith.constant 0 : index
    %c0_23 = arith.constant 0 : index
    %22 = vector.load %arg4[%c1, %c0_22, %c0_23] : memref<2x128x128xf32, #tpu.memory_space<vmem>>, vector<1x128x128xf32>
    %23 = vector.shape_cast %22 : vector<1x128x128xf32> to vector<128x128xf32>
    %cst_24 = arith.constant dense<0.000000e+00> : vector<64x128xf32>
    %24 = tpu.matmul %21, %23, %cst_24 {dimension_numbers = #tpu.dot_dimension_numbers<[1], [0], [0], [1], [0, 0, 1, 1], [], []>} : vector<64x128xf32>, vector<128x128xf32>, vector<64x128xf32> -> vector<64x128xf32>
    %c1_25 = arith.constant 1 : index
    %c0_26 = arith.constant 0 : index
    %c0_27 = arith.constant 0 : index
    %25 = vector.load %arg5[%c1_25, %c0_26, %c0_27] : memref<2x1x128xf32, #tpu.memory_space<vmem>>, vector<1x1x128xf32>
    %26 = vector.shape_cast %25 : vector<1x1x128xf32> to vector<1x128xf32>
    %27 = vector.broadcast %26 : vector<1x128xf32> to vector<64x128xf32>
    %28 = arith.addf %24, %27 : vector<64x128xf32>
    %cst_28 = arith.constant 0.000000e+00 : f32
    %29 = vector.broadcast %cst_28 : f32 to vector<64x128xf32>
    %30 = arith.maximumf %28, %29 : vector<64x128xf32>
    %31 = arith.addf %30, %21 : vector<64x128xf32>
    %c0_29 = arith.constant 0 : index
    %c0_30 = arith.constant 0 : index
    %32 = vector.load %arg9[%c0_29, %c0_30] : memref<64x128xf32, #tpu.memory_space<vmem>>, vector<64x128xf32>
    tpu.vector_store %arg9[%c0_29, %c0_30], %31 {strides = array<i32>} : memref<64x128xf32, #tpu.memory_space<vmem>>, vector<64x128xf32>,
    %c0_31 = arith.constant 0 : index
    %c0_32 = arith.constant 0 : index
    %33 = vector.load %arg9[%c0_31, %c0_32] : memref<64x128xf32, #tpu.memory_space<vmem>>, vector<64x128xf32>
    %c0_33 = arith.constant 0 : index
    %c0_34 = arith.constant 0 : index
    %34 = vector.load %arg6[%c0_33, %c0_34] : memref<128x128xf32, #tpu.memory_space<vmem>>, vector<128x128xf32>
    %cst_35 = arith.constant dense<0.000000e+00> : vector<64x128xf32>
    %35 = tpu.matmul %33, %34, %cst_35 {dimension_numbers = #tpu.dot_dimension_numbers<[1], [0], [0], [1], [0, 0, 1, 1], [], []>} : vector<64x128xf32>, vector<128x128xf32>, vector<64x128xf32> -> vector<64x128xf32>
    %c0_36 = arith.constant 0 : index
    %c0_37 = arith.constant 0 : index
    %36 = vector.load %arg7[%c0_36, %c0_37] : memref<1x128xf32, #tpu.memory_space<vmem>>, vector<1x128xf32>
    %37 = vector.broadcast %36 : vector<1x128xf32> to vector<64x128xf32>
    %38 = arith.addf %35, %37 : vector<64x128xf32>
    %cst_38 = arith.constant 0.000000e+00 : f32
    %39 = vector.broadcast %cst_38 : f32 to vector<64x128xf32>
    %40 = arith.maximumf %38, %39 : vector<64x128xf32>
    %41 = arith.addf %40, %33 : vector<64x128xf32>
    %c0_39 = arith.constant 0 : index
    %c0_40 = arith.constant 0 : index
    %42 = vector.load %arg8[%c0_39, %c0_40] : memref<64x128xf32, #tpu.memory_space<vmem>>, vector<64x128xf32>
    tpu.vector_store %arg8[%c0_39, %c0_40], %41 {strides = array<i32>} : memref<64x128xf32, #tpu.memory_space<vmem>>, vector<64x128xf32>,
    return
  }
  func.func @transform_0(%arg0: i32) -> (i32, i32) {
    %c0_i32 = arith.constant 0 : i32
    %c0_i32_0 = arith.constant 0 : i32
    return %arg0, %c0_i32 : i32, i32
  }
  func.func @transform_1(%arg0: i32) -> (i32, i32) {
    %c0_i32 = arith.constant 0 : i32
    %c0_i32_0 = arith.constant 0 : i32
    %c0_i32_1 = arith.constant 0 : i32
    return %c0_i32, %c0_i32_0 : i32, i32
  }
  func.func @transform_2(%arg0: i32) -> (i32, i32) {
    %c0_i32 = arith.constant 0 : i32
    %c0_i32_0 = arith.constant 0 : i32
    %c0_i32_1 = arith.constant 0 : i32
    return %c0_i32, %c0_i32_0 : i32, i32
  }
  func.func @transform_3(%arg0: i32) -> (i32, i32, i32) {
    %c0_i32 = arith.constant 0 : i32
    %c0_i32_0 = arith.constant 0 : i32
    %c0_i32_1 = arith.constant 0 : i32
    %c0_i32_2 = arith.constant 0 : i32
    return %c0_i32, %c0_i32_0, %c0_i32_1 : i32, i32, i32
  }
  func.func @transform_4(%arg0: i32) -> (i32, i32, i32) {
    %c0_i32 = arith.constant 0 : i32
    %c0_i32_0 = arith.constant 0 : i32
    %c0_i32_1 = arith.constant 0 : i32
    %c0_i32_2 = arith.constant 0 : i32
    return %c0_i32, %c0_i32_0, %c0_i32_1 : i32, i32, i32
  }
  func.func @transform_5(%arg0: i32) -> (i32, i32) {
    %c0_i32 = arith.constant 0 : i32
    %c0_i32_0 = arith.constant 0 : i32
    %c0_i32_1 = arith.constant 0 : i32
    return %c0_i32, %c0_i32_0 : i32, i32
  }
  func.func @transform_6(%arg0: i32) -> (i32, i32) {
    %c0_i32 = arith.constant 0 : i32
    %c0_i32_0 = arith.constant 0 : i32
    %c0_i32_1 = arith.constant 0 : i32
    return %c0_i32, %c0_i32_0 : i32, i32
  }
  func.func @transform_7(%arg0: i32) -> (i32, i32) {
    %c0_i32 = arith.constant 0 : i32
    %c0_i32_0 = arith.constant 0 : i32
    return %arg0, %c0_i32 : i32, i32
  }
}

module attributes {stable_mosaic.version = 11 : i64} {
  func.func @_fused_mlp_kernel(%arg0: i32, %arg1: memref<64x128xf32, #tpu.memory_space<vmem>>, %arg2: memref<128x128xf32, #tpu.memory_space<vmem>>, %arg3: memref<1x128xf32, #tpu.memory_space<vmem>>, %arg4: memref<2x128x128xf32, #tpu.memory_space<vmem>>, %arg5: memref<2x1x128xf32, #tpu.memory_space<vmem>>, %arg6: memref<128x128xf32, #tpu.memory_space<vmem>>, %arg7: memref<1x128xf32, #tpu.memory_space<vmem>>, %arg8: memref<64x128xf32, #tpu.memory_space<vmem>>, %arg9: memref<64x128xf32, #tpu.memory_space<vmem>>) attributes {dimension_semantics = [#tpu.dimension_semantics<parallel>], iteration_bounds = array<i64: 4>, scalar_prefetch = 0 : i64, scratch_operands = 1 : i64, tpu.core_type = #tpu.core_type<tc>, window_params = [{transform_indices = @transform_0, window_bounds = array<i64: 64, 128>}, {pipeline_mode = #tpu.pipeline_mode<synchronous>, transform_indices = @transform_1, window_bounds = array<i64: 128, 128>}, {pipeline_mode = #tpu.pipeline_mode<synchronous>, transform_indices = @transform_2, window_bounds = array<i64: 1, 128>}, {pipeline_mode = #tpu.pipeline_mode<synchronous>, transform_indices = @transform_3, window_bounds = array<i64: 2, 128, 128>}, {pipeline_mode = #tpu.pipeline_mode<synchronous>, transform_indices = @transform_4, window_bounds = array<i64: 2, 1, 128>}, {pipeline_mode = #tpu.pipeline_mode<synchronous>, transform_indices = @transform_5, window_bounds = array<i64: 128, 128>}, {pipeline_mode = #tpu.pipeline_mode<synchronous>, transform_indices = @transform_6, window_bounds = array<i64: 1, 128>}, {transform_indices = @transform_7, window_bounds = array<i64: 64, 128>}]} {
    %c0 = arith.constant 0 : index
    %c0_0 = arith.constant 0 : index
    %0 = vector.load %arg1[%c0, %c0_0] : memref<64x128xf32, #tpu.memory_space<vmem>>, vector<64x128xf32>
    %c0_1 = arith.constant 0 : index
    %c0_2 = arith.constant 0 : index
    %1 = vector.load %arg2[%c0_1, %c0_2] : memref<128x128xf32, #tpu.memory_space<vmem>>, vector<128x128xf32>
    %cst = arith.constant dense<0.000000e+00> : vector<64x128xf32>
    %2 = tpu.matmul %0, %1, %cst {dimension_numbers = #tpu.dot_dimension_numbers<[1], [0], [0], [1], [0, 0, 1, 1], [], []>} : vector<64x128xf32>, vector<128x128xf32>, vector<64x128xf32> -> vector<64x128xf32>
    %c0_3 = arith.constant 0 : index
    %c0_4 = arith.constant 0 : index
    %3 = vector.load %arg3[%c0_3, %c0_4] : memref<1x128xf32, #tpu.memory_space<vmem>>, vector<1x128xf32>
    %4 = vector.broadcast %3 : vector<1x128xf32> to vector<64x128xf32>
    %5 = arith.addf %2, %4 : vector<64x128xf32>
    %cst_5 = arith.constant 0.000000e+00 : f32
    %6 = vector.broadcast %cst_5 : f32 to vector<64x128xf32>
    %7 = arith.maximumf %5, %6 : vector<64x128xf32>
    %c0_6 = arith.constant 0 : index
    %c0_7 = arith.constant 0 : index
    %8 = vector.load %arg9[%c0_6, %c0_7] : memref<64x128xf32, #tpu.memory_space<vmem>>, vector<64x128xf32>
    tpu.vector_store %arg9[%c0_6, %c0_7], %7 {strides = array<i32>} : memref<64x128xf32, #tpu.memory_space<vmem>>, vector<64x128xf32>,
    %c0_8 = arith.constant 0 : index
    %c0_9 = arith.constant 0 : index
    %9 = vector.load %arg9[%c0_8, %c0_9] : memref<64x128xf32, #tpu.memory_space<vmem>>, vector<64x128xf32>
    %c0_10 = arith.constant 0 : index
    %c0_11 = arith.constant 0 : index
    %c0_12 = arith.constant 0 : index
    %10 = vector.load %arg4[%c0_10, %c0_11, %c0_12] : memref<2x128x128xf32, #tpu.memory_space<vmem>>, vector<1x128x128xf32>
    %11 = vector.shape_cast %10 : vector<1x128x128xf32> to vector<128x128xf32>
    %cst_13 = arith.constant dense<0.000000e+00> : vector<64x128xf32>
    %12 = tpu.matmul %9, %11, %cst_13 {dimension_numbers = #tpu.dot_dimension_numbers<[1], [0], [0], [1], [0, 0, 1, 1], [], []>} : vector<64x128xf32>, vector<128x128xf32>, vector<64x128xf32> -> vector<64x128xf32>
    %c0_14 = arith.constant 0 : index
    %c0_15 = arith.constant 0 : index
    %c0_16 = arith.constant 0 : index
    %13 = vector.load %arg5[%c0_14, %c0_15, %c0_16] : memref<2x1x128xf32, #tpu.memory_space<vmem>>, vector<1x1x128xf32>
    %14 = vector.shape_cast %13 : vector<1x1x128xf32> to vector<1x128xf32>
    %15 = vector.broadcast %14 : vector<1x128xf32> to vector<64x128xf32>
    %16 = arith.addf %12, %15 : vector<64x128xf32>
    %cst_17 = arith.constant 0.000000e+00 : f32
    %17 = vector.broadcast %cst_17 : f32 to vector<64x128xf32>
    %18 = arith.maximumf %16, %17 : vector<64x128xf32>
    %19 = arith.addf %18, %9 : vector<64x128xf32>
    %c0_18 = arith.constant 0 : index
    %c0_19 = arith.constant 0 : index
    %20 = vector.load %arg9[%c0_18, %c0_19] : memref<64x128xf32, #tpu.memory_space<vmem>>, vector<64x128xf32>
    tpu.vector_store %arg9[%c0_18, %c0_19], %19 {strides = array<i32>} : memref<64x128xf32, #tpu.memory_space<vmem>>, vector<64x128xf32>,
    %c0_20 = arith.constant 0 : index
    %c0_21 = arith.constant 0 : index
    %21 = vector.load %arg9[%c0_20, %c0_21] : memref<64x128xf32, #tpu.memory_space<vmem>>, vector<64x128xf32>
    %c1 = arith.constant 1 : index
    %c0_22 = arith.constant 0 : index
    %c0_23 = arith.constant 0 : index
    %22 = vector.load %arg4[%c1, %c0_22, %c0_23] : memref<2x128x128xf32, #tpu.memory_space<vmem>>, vector<1x128x128xf32>
    %23 = vector.shape_cast %22 : vector<1x128x128xf32> to vector<128x128xf32>
    %cst_24 = arith.constant dense<0.000000e+00> : vector<64x128xf32>
    %24 = tpu.matmul %21, %23, %cst_24 {dimension_numbers = #tpu.dot_dimension_numbers<[1], [0], [0], [1], [0, 0, 1, 1], [], []>} : vector<64x128xf32>, vector<128x128xf32>, vector<64x128xf32> -> vector<64x128xf32>
    %c1_25 = arith.constant 1 : index
    %c0_26 = arith.constant 0 : index
    %c0_27 = arith.constant 0 : index
    %25 = vector.load %arg5[%c1_25, %c0_26, %c0_27] : memref<2x1x128xf32, #tpu.memory_space<vmem>>, vector<1x1x128xf32>
    %26 = vector.shape_cast %25 : vector<1x1x128xf32> to vector<1x128xf32>
    %27 = vector.broadcast %26 : vector<1x128xf32> to vector<64x128xf32>
    %28 = arith.addf %24, %27 : vector<64x128xf32>
    %cst_28 = arith.constant 0.000000e+00 : f32
    %29 = vector.broadcast %cst_28 : f32 to vector<64x128xf32>
    %30 = arith.maximumf %28, %29 : vector<64x128xf32>
    %31 = arith.addf %30, %21 : vector<64x128xf32>
    %c0_29 = arith.constant 0 : index
    %c0_30 = arith.constant 0 : index
    %32 = vector.load %arg9[%c0_29, %c0_30] : memref<64x128xf32, #tpu.memory_space<vmem>>, vector<64x128xf32>
    tpu.vector_store %arg9[%c0_29, %c0_30], %31 {strides = array<i32>} : memref<64x128xf32, #tpu.memory_space<vmem>>, vector<64x128xf32>,
    %c0_31 = arith.constant 0 : index
    %c0_32 = arith.constant 0 : index
    %33 = vector.load %arg9[%c0_31, %c0_32] : memref<64x128xf32, #tpu.memory_space<vmem>>, vector<64x128xf32>
    %c0_33 = arith.constant 0 : index
    %c0_34 = arith.constant 0 : index
    %34 = vector.load %arg6[%c0_33, %c0_34] : memref<128x128xf32, #tpu.memory_space<vmem>>, vector<128x128xf32>
    %cst_35 = arith.constant dense<0.000000e+00> : vector<64x128xf32>
    %35 = tpu.matmul %33, %34, %cst_35 {dimension_numbers = #tpu.dot_dimension_numbers<[1], [0], [0], [1], [0, 0, 1, 1], [], []>} : vector<64x128xf32>, vector<128x128xf32>, vector<64x128xf32> -> vector<64x128xf32>
    %c0_36 = arith.constant 0 : index
    %c0_37 = arith.constant 0 : index
    %36 = vector.load %arg7[%c0_36, %c0_37] : memref<1x128xf32, #tpu.memory_space<vmem>>, vector<1x128xf32>
    %37 = vector.broadcast %36 : vector<1x128xf32> to vector<64x128xf32>
    %38 = arith.addf %35, %37 : vector<64x128xf32>
    %cst_38 = arith.constant 0.000000e+00 : f32
    %39 = vector.broadcast %cst_38 : f32 to vector<64x128xf32>
    %40 = arith.maximumf %38, %39 : vector<64x128xf32>
    %41 = arith.addf %40, %33 : vector<64x128xf32>
    %c0_39 = arith.constant 0 : index
    %c0_40 = arith.constant 0 : index
    %42 = vector.load %arg8[%c0_39, %c0_40] : memref<64x128xf32, #tpu.memory_space<vmem>>, vector<64x128xf32>
    tpu.vector_store %arg8[%c0_39, %c0_40], %41 {strides = array<i32>} : memref<64x128xf32, #tpu.memory_space<vmem>>, vector<64x128xf32>,
    return
  }
  func.func @transform_0(%arg0: i32) -> (i32, i32) {
    %c0_i32 = arith.constant 0 : i32
    %c0_i32_0 = arith.constant 0 : i32
    return %arg0, %c0_i32 : i32, i32
  }
  func.func @transform_1(%arg0: i32) -> (i32, i32) {
    %c0_i32 = arith.constant 0 : i32
    %c0_i32_0 = arith.constant 0 : i32
    %c0_i32_1 = arith.constant 0 : i32
    return %c0_i32, %c0_i32_0 : i32, i32
  }
  func.func @transform_2(%arg0: i32) -> (i32, i32) {
    %c0_i32 = arith.constant 0 : i32
    %c0_i32_0 = arith.constant 0 : i32
    %c0_i32_1 = arith.constant 0 : i32
    return %c0_i32, %c0_i32_0 : i32, i32
  }
  func.func @transform_3(%arg0: i32) -> (i32, i32, i32) {
    %c0_i32 = arith.constant 0 : i32
    %c0_i32_0 = arith.constant 0 : i32
    %c0_i32_1 = arith.constant 0 : i32
    %c0_i32_2 = arith.constant 0 : i32
    return %c0_i32, %c0_i32_0, %c0_i32_1 : i32, i32, i32
  }
  func.func @transform_4(%arg0: i32) -> (i32, i32, i32) {
    %c0_i32 = arith.constant 0 : i32
    %c0_i32_0 = arith.constant 0 : i32
    %c0_i32_1 = arith.constant 0 : i32
    %c0_i32_2 = arith.constant 0 : i32
    return %c0_i32, %c0_i32_0, %c0_i32_1 : i32, i32, i32
  }
  func.func @transform_5(%arg0: i32) -> (i32, i32) {
    %c0_i32 = arith.constant 0 : i32
    %c0_i32_0 = arith.constant 0 : i32
    %c0_i32_1 = arith.constant 0 : i32
    return %c0_i32, %c0_i32_0 : i32, i32
  }
  func.func @transform_6(%arg0: i32) -> (i32, i32) {
    %c0_i32 = arith.constant 0 : i32
    %c0_i32_0 = arith.constant 0 : i32
    %c0_i32_1 = arith.constant 0 : i32
    return %c0_i32, %c0_i32_0 : i32, i32
  }
  func.func @transform_7(%arg0: i32) -> (i32, i32) {
    %c0_i32 = arith.constant 0 : i32
    %c0_i32_0 = arith.constant 0 : i32
    return %arg0, %c0_i32 : i32, i32
  }
}

</mosaic_0001>

<bundles_post_ra>
// kernel: _forward.1
= control target key start
LH: loop header
LB: loop body
LE: loop exit
PB: predicated region body
PF: predicated region fallthrough
CT: control target
= control target key end

     0   :  { %s792_s24 = smov 0   ;;  %s1116_s0 = inlined_call_operand.vmem [shape: f32[256,128], index: 0, kind: input, shape index: {}]   ;;  %s1117_s1 = inlined_call_operand.vmem [shape: f32[128,128], index: 1, kind: input, shape index: {}]   ;;  %s1118_s2 = inlined_call_operand.vmem [shape: f32[1,128], index: 2, kind: input, shape index: {}]   ;;  %s1119_s3 = inlined_call_operand.vmem [shape: f32[2,128,128], index: 3, kind: input, shape index: {}]   ;;  %s1120_s4 = inlined_call_operand.vmem [shape: f32[2,1,128], index: 4, kind: input, shape index: {}]   ;;  %s1121_s5 = inlined_call_operand.vmem [shape: f32[128,128], index: 5, kind: input, shape index: {}]   ;;  %s1122_s6 = inlined_call_operand.vmem [shape: f32[1,128], index: 6, kind: input, shape index: {}]   ;;  %s1123_s7 = inlined_call_operand.vmem [shape: f32[256,128], index: 7, kind: output, shape index: {}]  }
   0x1 LB: > { %s704_s25 = sadd.s32 4294967295, %s750_s24   ;;  %p708_p0 = scmp.ge.s32.totalorder %s750_s24, 1  ;;  %s750_s24 = sphi %s792_s24, %s17_s24  }
   0x2   : > { %p238_p1 = scmp.lt.s32.totalorder %s750_s24, 5 }
   0x4   : > { %p239_p2 = pnand %p708_p0, %p238_p1 }
   0x5   : > { %s709_s19 = sshll.u32 (!%p239_p2), %s704_s25, 3 }
   0x6   : > { %242 = sbr.rel (%p239_p2) target bundleno = 638 (0x27e), region = 48  ;;  %p271_p3 = scmp.lt.s32.totalorder (!%p239_p2), %s709_s19, 31 }
   0xb   : > { %v305_v0 = vld [vmem:[%s1117_s1 + $0x78] sm:$0xff]  ;;  %v304_v1 = vld [vmem:[%s1117_s1 + $0x70] sm:$0xff]  ;;  %v303_v2 = vld [vmem:[%s1117_s1 + $0x68] sm:$0xff]  ;;  %s1125_s19 = smov (!%p271_p3, %s709_s19), 31 }
   0xc   : > { %310 = vmatpush.msra.mxu0 %v305_v0  ;;  %v302_v3 = vld [vmem:[%s1117_s1 + $0x60] sm:$0xff]  ;;  %v301_v4 = vld [vmem:[%s1117_s1 + $0x58] sm:$0xff]  ;;  %v300_v5 = vld [vmem:[%s1117_s1 + $0x50] sm:$0xff]  ;;  %s710_s8 = sshll.u32 %s1125_s19, 3 }
   0xd   : > { %v299_v6 = vld [vmem:[%s1117_s1 + $0x48] sm:$0xff]  ;;  %v298_v7 = vld [vmem:[%s1117_s1 + $0x40] sm:$0xff]  ;;  %v297_v8 = vld [vmem:[%s1117_s1 + $0x38] sm:$0xff]  ;;  %s853_s15 = scalar_lea.vmem %s1116_s0, %s710_s8  ;;  %s1103_s25 = scalar_lea.vmem %s1123_s7, %s710_s8 }
   0xe   : > { %311 = vmatpush.msra.mxu0 %v304_v1  ;;  %v296_v9 = vld [vmem:[%s1117_s1 + $0x30] sm:$0xff]  ;;  %v295_v10 = vld [vmem:[%s1117_s1 + $0x28] sm:$0xff]  ;;  %v294_v11 = vld [vmem:[%s1117_s1 + $0x20] sm:$0xff] }
   0xf   : > { %v293_v12 = vld [vmem:[%s1117_s1 + $0x18] sm:$0xff]  ;;  %v292_v13 = vld [vmem:[%s1117_s1 + $0x10] sm:$0xff]  ;;  %v291_v14 = vld [vmem:[%s1117_s1 + $0x8] sm:$0xff] }
  0x10   : > { %312 = vmatpush.msra.mxu0 %v303_v2  ;;  %v290_v15 = vld [vmem:[%s1117_s1] sm:$0xff]  ;;  %v283_v17 = vld [vmem:[%s853_s15 + $0x8] sm:$0xff]  ;;  %v284_v18 = vld [vmem:[%s853_s15 + $0x10] sm:$0xff] }
  0x11   : > { %v282_v16 = vld [vmem:[%s853_s15] sm:$0xff]  ;;  %v285_v19 = vld [vmem:[%s853_s15 + $0x18] sm:$0xff]  ;;  %v389_v21 = vld [vmem:[%s1119_s3 + $0x70] sm:$0xff] }
  0x12   : > { %313 = vmatpush.msra.mxu0 %v302_v3  ;;  %v390_v20 = vld [vmem:[%s1119_s3 + $0x78] sm:$0xff]  ;;  %v388_v22 = vld [vmem:[%s1119_s3 + $0x68] sm:$0xff]  ;;  %v387_v23 = vld [vmem:[%s1119_s3 + $0x60] sm:$0xff] }
  0x13   : > { %395 = vmatpush.msra.mxu1 %v390_v20  ;;  %v286_v24 = vld [vmem:[%s853_s15 + $0x20] sm:$0xff]  ;;  %v386_v25 = vld [vmem:[%s1119_s3 + $0x58] sm:$0xff]  ;;  %v385_v26 = vld [vmem:[%s1119_s3 + $0x50] sm:$0xff] }
  0x14   : > { %314 = vmatpush.msra.mxu0 %v301_v4  ;;  %v384_v27 = vld [vmem:[%s1119_s3 + $0x48] sm:$0xff]  ;;  %v383_v28 = vld [vmem:[%s1119_s3 + $0x40] sm:$0xff]  ;;  %v382_v30 = vld [vmem:[%s1119_s3 + $0x38] sm:$0xff] }
  0x15   : > { %396 = vmatpush.msra.mxu1 %v389_v21  ;;  %v287_v29 = vld [vmem:[%s853_s15 + $0x28] sm:$0xff]  ;;  %v381_v31 = vld [vmem:[%s1119_s3 + $0x30] sm:$0xff]  ;;  %v379_v33 = vld [vmem:[%s1119_s3 + $0x20] sm:$0xff] }
  0x16   : > { %315 = vmatpush.msra.mxu0 %v300_v5  ;;  %v380_v32 = vld [vmem:[%s1119_s3 + $0x28] sm:$0xff]  ;;  %v288_v34 = vld [vmem:[%s853_s15 + $0x30] sm:$0xff]  ;;  %v378_v35 = vld [vmem:[%s1119_s3 + $0x18] sm:$0xff] }
  0x17   : > { %397 = vmatpush.msra.mxu1 %v388_v22  ;;  %v289_v36 = vld [vmem:[%s853_s15 + $0x38] sm:$0xff]  ;;  %v377_v37 = vld [vmem:[%s1119_s3 + $0x10] sm:$0xff]  ;;  %v376_v38 = vld [vmem:[%s1119_s3 + $0x8] sm:$0xff] }
  0x18   : > { %316 = vmatpush.msra.mxu0 %v299_v6  ;;  %v375_v39 = vld [vmem:[%s1119_s3] sm:$0xff]  ;;  %v728_v53 = vld [vmem:[%s1119_s3 + $0xf8] sm:$0xff]  ;;  %v727_v54 = vld [vmem:[%s1119_s3 + $0xf0] sm:$0xff] }
  0x19   : > { %398 = vmatpush.msra.mxu1 %v387_v23  ;;  %v740_v40 = vld [vmem:[%s1118_s2] ss:$0 sm:$0xff]  ;;  %490 = vmatpush.msra.mxu2 %v728_v53  ;;  %v726_v55 = vld [vmem:[%s1119_s3 + $0xe8] sm:$0xff]  ;;  %v724_v60 = vld [vmem:[%s1119_s3 + $0xd8] sm:$0xff] }
  0x1a   : > { %317 = vmatpush.msra.mxu0 %v298_v7  ;;  %v725_v58 = vld [vmem:[%s1119_s3 + $0xe0] sm:$0xff]  ;;  %v723_v61 = vld [vmem:[%s1119_s3 + $0xd0] sm:$0xff]  ;;  %v722_v62 = vld [vmem:[%s1119_s3 + $0xc8] sm:$0xff] }
  0x1b   : > { %399 = vmatpush.msra.mxu1 %v386_v25  ;;  %491 = vmatpush.msra.mxu2 %v727_v54  ;;  %v721_v1 = vld [vmem:[%s1119_s3 + $0xc0] sm:$0xff]  ;;  %v720_v3 = vld [vmem:[%s1119_s3 + $0xb8] sm:$0xff]  ;;  %v719_v4 = vld [vmem:[%s1119_s3 + $0xb0] sm:$0xff] }
  0x1c   : > { %318 = vmatpush.msra.mxu0 %v297_v8  ;;  %v718_v5 = vld [vmem:[%s1119_s3 + $0xa8] sm:$0xff]  ;;  %v717_v8 = vld [vmem:[%s1119_s3 + $0xa0] sm:$0xff] }
  0x1d   : > { %400 = vmatpush.msra.mxu1 %v385_v26  ;;  %492 = vmatpush.msra.mxu2 %v726_v55  ;;  %v568_v54 = vld [vmem:[%s1121_s5 + $0x28] sm:$0xff] }
  0x1e   : > { %319 = vmatpush.msra.mxu0 %v296_v9 }
  0x1f   : > { %401 = vmatpush.msra.mxu1 %v384_v27  ;;  %493 = vmatpush.msra.mxu2 %v725_v58 }
  0x20   : > { %320 = vmatpush.msra.mxu0 %v295_v10 }
  0x21   : > { %402 = vmatpush.msra.mxu1 %v383_v28  ;;  %494 = vmatpush.msra.mxu2 %v724_v60 }
  0x22   : > { %321 = vmatpush.msra.mxu0 %v294_v11 }
  0x23   : > { %403 = vmatpush.msra.mxu1 %v382_v30  ;;  %495 = vmatpush.msra.mxu2 %v723_v61 }
  0x24   : > { %322 = vmatpush.msra.mxu0 %v293_v12 }
  0x25   : > { %404 = vmatpush.msra.mxu1 %v381_v31  ;;  %496 = vmatpush.msra.mxu2 %v722_v62  ;;  %v566_v62 = vld [vmem:[%s1121_s5 + $0x18] sm:$0xff] }
  0x26   : > { %323 = vmatpush.msra.mxu0 %v292_v13  ;;  %v716_v13 = vld [vmem:[%s1119_s3 + $0x98] sm:$0xff] }
  0x27   : > { %405 = vmatpush.msra.mxu1 %v380_v32  ;;  %497 = vmatpush.msra.mxu2 %v721_v1  ;;  %v563_v1 = vld [vmem:[%s1121_s5] sm:$0xff] }
  0x28   : > { %324 = vmatpush.msra.mxu0 %v291_v14  ;;  %v715_v14 = vld [vmem:[%s1119_s3 + $0x90] sm:$0xff] }
  0x29   : > { %406 = vmatpush.msra.mxu1 %v379_v33  ;;  %498 = vmatpush.msra.mxu2 %v720_v3 }
  0x2a   : > { %325 = vmatpush.msra.mxu0 %v290_v15  ;;  %v714_v15 = vld [vmem:[%s1119_s3 + $0x88] sm:$0xff] }
  0x2b   : > { %326 = vmatmul.f32.vlgmr.msra.gmra.mxu0 %v282_v16  ;;  %407 = vmatpush.msra.mxu1 %v378_v35  ;;  %v713_v16 = vld [vmem:[%s1119_s3 + $0x80] sm:$0xff]  ;;  %v577_v35 = vld [vmem:[%s1121_s5 + $0x70] sm:$0xff] }
  0x2c   : > { %499 = vmatpush.msra.mxu2 %v719_v4 }
  0x2d   : > { %408 = vmatpush.msra.mxu1 %v377_v37 }
  0x2e   : > { %500 = vmatpush.msra.mxu2 %v718_v5 }
  0x2f   : > { %409 = vmatpush.msra.mxu1 %v376_v38  ;;  %v576_v38 = vld [vmem:[%s1121_s5 + $0x68] sm:$0xff] }
  0x30   : > { %501 = vmatpush.msra.mxu2 %v717_v8 }
  0x31   : > { %410 = vmatpush.msra.mxu1 %v375_v39 }
  0x32   : > { %502 = vmatpush.msra.mxu2 %v716_v13 }
  0x33   : > { %329 = vmatmul.f32.gmra.mxu0 %v283_v17  ;;  %v741_v17 = vld [vmem:[%s1120_s4] ss:$0 sm:$0xff] }
  0x34   : > { %503 = vmatpush.msra.mxu2 %v715_v14 }
  0x36   : > { %504 = vmatpush.msra.mxu2 %v714_v15 }
  0x38   : > { %505 = vmatpush.msra.mxu2 %v713_v16 }
  0x3b   : > { %332 = vmatmul.f32.gmra.mxu0 %v284_v18 }
  0x43   : > { %335 = vmatmul.f32.gmra.mxu0 %v285_v19 }
  0x4b   : > { %338 = vmatmul.f32.gmra.mxu0 %v286_v24 }
  0x53   : > { %341 = vmatmul.f32.gmra.mxu0 %v287_v29 }
  0x5b   : > { %344 = vmatmul.f32.gmra.mxu0 %v288_v34  ;;  %v578_v34 = vld [vmem:[%s1121_s5 + $0x78] sm:$0xff] }
  0x5c   : > { %583 = vmatpush.msra.mxu3 %v578_v34 }
  0x5e   : > { %584 = vmatpush.msra.mxu3 %v577_v35  ;;  %v743_v35 = vld [vmem:[%s1122_s6] ss:$0 sm:$0xff] }
  0x60   : > { %585 = vmatpush.msra.mxu3 %v576_v38 }
  0x63   : > { %347 = vmatmul.f32.gmra.mxu0 %v289_v36 }
  0xa8   : > { %v327_v41 = vpop.f32.mrf.mxu0 }
  0xa9   : > { %v917_v42 = vadd.f32 %v740_v40, %v327_v41 }
  0xab   : > { %v351_v43 = vmax.f32 %v917_v42, 0.0  ;;  %v574_v42 = vld [vmem:[%s1121_s5 + $0x58] sm:$0xff] }
  0xad   : > { %411 = vmatmul.f32.vlgmr.msra.gmra.mxu1 %v351_v43 }
  0xb0   : > { %v330_v44 = vpop.f32.mrf.mxu0 }
  0xb1   : > { %v922_v45 = vadd.f32 %v740_v40, %v330_v44 }
  0xb3   : > { %v352_v46 = vmax.f32 %v922_v45, 0.0 }
  0xb5   : > { %414 = vmatmul.f32.gmra.mxu1 %v352_v46 }
  0xb8   : > { %v333_v47 = vpop.f32.mrf.mxu0 }
  0xb9   : > { %v927_v48 = vadd.f32 %v740_v40, %v333_v47 }
  0xbb   : > { %v353_v49 = vmax.f32 %v927_v48, 0.0  ;;  %v571_v48 = vld [vmem:[%s1121_s5 + $0x40] sm:$0xff] }
  0xbd   : > { %417 = vmatmul.f32.gmra.mxu1 %v353_v49 }
  0xc0   : > { %v336_v50 = vpop.f32.mrf.mxu0 }
  0xc1   : > { %v932_v51 = vadd.f32 %v740_v40, %v336_v50  ;;  %v570_v50 = vld [vmem:[%s1121_s5 + $0x38] sm:$0xff] }
  0xc3   : > { %v354_v52 = vmax.f32 %v932_v51, 0.0  ;;  %v569_v51 = vld [vmem:[%s1121_s5 + $0x30] sm:$0xff] }
  0xc5   : > { %420 = vmatmul.f32.gmra.mxu1 %v354_v52 }
  0xc8   : > { %v339_v56 = vpop.f32.mrf.mxu0 }
  0xc9   : > { %v946_v57 = vadd.f32 %v740_v40, %v339_v56  ;;  %v567_v56 = vld [vmem:[%s1121_s5 + $0x20] sm:$0xff] }
  0xcb   : > { %v355_v59 = vmax.f32 %v946_v57, 0.0 }
  0xcd   : > { %423 = vmatmul.f32.gmra.mxu1 %v355_v59 }
  0xd0   : > { %v342_v63 = vpop.f32.mrf.mxu0 }
  0xd1   : > { %v963_v0 = vadd.f32 %v740_v40, %v342_v63  ;;  %v565_v63 = vld [vmem:[%s1121_s5 + $0x10] sm:$0xff] }
  0xd3   : > { %v356_v2 = vmax.f32 %v963_v0, 0.0  ;;  %v564_v0 = vld [vmem:[%s1121_s5 + $0x8] sm:$0xff] }
  0xd5   : > { %426 = vmatmul.f32.gmra.mxu1 %v356_v2 }
  0xd8   : > { %v345_v6 = vpop.f32.mrf.mxu0 }
  0xd9   : > { %v980_v7 = vadd.f32 %v740_v40, %v345_v6 }
  0xdb   : > { %v357_v9 = vmax.f32 %v980_v7, 0.0 }
  0xdd   : > { %429 = vmatmul.f32.gmra.mxu1 %v357_v9 }
  0xe0   : > { %v348_v10 = vpop.f32.mrf.mxu0 }
  0xe1   : > { %v988_v11 = vadd.f32 %v740_v40, %v348_v10  ;;  %v575_v40 = vld [vmem:[%s1121_s5 + $0x60] sm:$0xff] }
  0xe2   : > { %586 = vmatpush.msra.mxu3 %v575_v40 }
  0xe3   : > { %v358_v12 = vmax.f32 %v988_v11, 0.0 }
  0xe4   : > { %587 = vmatpush.msra.mxu3 %v574_v42 }
  0xe5   : > { %432 = vmatmul.f32.gmra.mxu1 %v358_v12 }
 0x12a   : > { %v412_v18 = vpop.f32.mrf.mxu1 }
 0x12b   : > { %v413_v19 = vadd.f32 %v741_v17, %v412_v18 }
 0x12d   : > { %v436_v20 = vmax.f32 %v413_v19, 0.0 }
 0x12f   : > { %v1010_v21 = vadd.f32 %v436_v20, %v351_v43  ;;  %v573_v43 = vld [vmem:[%s1121_s5 + $0x50] sm:$0xff] }
 0x130   : > { %588 = vmatpush.msra.mxu3 %v573_v43 }
 0x131   : > { %506 = vmatmul.f32.vlgmr.msra.gmra.mxu2 %v1010_v21 }
 0x132   : > { %v415_v22 = vpop.f32.mrf.mxu1 }
 0x133   : > { %v416_v23 = vadd.f32 %v741_v17, %v415_v22 }
 0x135   : > { %v437_v24 = vmax.f32 %v416_v23, 0.0 }
 0x137   : > { %v1015_v25 = vadd.f32 %v437_v24, %v352_v46  ;;  %v572_v46 = vld [vmem:[%s1121_s5 + $0x48] sm:$0xff] }
 0x138   : > { %589 = vmatpush.msra.mxu3 %v572_v46 }
 0x139   : > { %509 = vmatmul.f32.gmra.mxu2 %v1015_v25 }
 0x13a   : > { %v418_v26 = vpop.f32.mrf.mxu1  ;;  %590 = vmatpush.msra.mxu3 %v571_v48 }
 0x13b   : > { %v419_v27 = vadd.f32 %v741_v17, %v418_v26 }
 0x13c   : > { %591 = vmatpush.msra.mxu3 %v570_v50 }
 0x13d   : > { %v438_v28 = vmax.f32 %v419_v27, 0.0 }
 0x13e   : > { %592 = vmatpush.msra.mxu3 %v569_v51 }
 0x13f   : > { %v1020_v29 = vadd.f32 %v438_v28, %v353_v49 }
 0x140   : > { %593 = vmatpush.msra.mxu3 %v568_v54 }
 0x141   : > { %512 = vmatmul.f32.gmra.mxu2 %v1020_v29 }
 0x142   : > { %v421_v30 = vpop.f32.mrf.mxu1  ;;  %594 = vmatpush.msra.mxu3 %v567_v56 }
 0x143   : > { %v422_v31 = vadd.f32 %v741_v17, %v421_v30 }
 0x144   : > { %595 = vmatpush.msra.mxu3 %v566_v62 }
 0x145   : > { %v439_v32 = vmax.f32 %v422_v31, 0.0 }
 0x146   : > { %596 = vmatpush.msra.mxu3 %v565_v63 }
 0x147   : > { %v1025_v33 = vadd.f32 %v439_v32, %v354_v52 }
 0x148   : > { %597 = vmatpush.msra.mxu3 %v564_v0 }
 0x149   : > { %515 = vmatmul.f32.gmra.mxu2 %v1025_v33 }
 0x14a   : > { %v424_v36 = vpop.f32.mrf.mxu1  ;;  %598 = vmatpush.msra.mxu3 %v563_v1 }
 0x14b   : > { %v425_v37 = vadd.f32 %v741_v17, %v424_v36 }
 0x14d   : > { %v440_v39 = vmax.f32 %v425_v37, 0.0 }
 0x14f   : > { %v1042_v41 = vadd.f32 %v440_v39, %v355_v59 }
 0x151   : > { %518 = vmatmul.f32.gmra.mxu2 %v1042_v41 }
 0x152   : > { %v427_v44 = vpop.f32.mrf.mxu1 }
 0x153   : > { %v428_v45 = vadd.f32 %v741_v17, %v427_v44 }
 0x155   : > { %v441_v47 = vmax.f32 %v428_v45, 0.0 }
 0x157   : > { %v449_v49 = vadd.f32 %v441_v47, %v356_v2  ;;  %v742_v2 = vld [vmem:[%s1120_s4 + $0x1] ss:$0 sm:$0xff] }
 0x159   : > { %521 = vmatmul.f32.gmra.mxu2 %v449_v49 }
 0x15a   : > { %v430_v52 = vpop.f32.mrf.mxu1 }
 0x15b   : > { %v431_v53 = vadd.f32 %v741_v17, %v430_v52 }
 0x15d   : > { %v442_v55 = vmax.f32 %v431_v53, 0.0 }
 0x15f   : > { %v450_v57 = vadd.f32 %v442_v55, %v357_v9 }
 0x161   : > { %524 = vmatmul.f32.gmra.mxu2 %v450_v57 }
 0x162   : > { %v433_v58 = vpop.f32.mrf.mxu1 }
 0x163   : > { %v434_v59 = vadd.f32 %v741_v17, %v433_v58 }
 0x165   : > { %v443_v60 = vmax.f32 %v434_v59, 0.0 }
 0x167   : > { %v451_v61 = vadd.f32 %v443_v60, %v358_v12 }
 0x169   : > { %527 = vmatmul.f32.gmra.mxu2 %v451_v61 }
 0x1b4   : > { %v507_v3 = vpop.f32.mrf.mxu2 }
 0x1b5   : > { %v508_v4 = vadd.f32 %v742_v2, %v507_v3 }
 0x1b7   : > { %v531_v5 = vmax.f32 %v508_v4, 0.0 }
 0x1b9   : > { %v539_v6 = vadd.f32 %v531_v5, %v1010_v21 }
 0x1bb   : > { %599 = vmatmul.f32.vlgmr.msra.gmra.mxu3 %v539_v6 }
 0x1bc   : > { %v510_v7 = vpop.f32.mrf.mxu2 }
 0x1bd   : > { %v511_v8 = vadd.f32 %v742_v2, %v510_v7 }
 0x1bf   : > { %v532_v9 = vmax.f32 %v511_v8, 0.0 }
 0x1c1   : > { %v540_v10 = vadd.f32 %v532_v9, %v1015_v25 }
 0x1c3   : > { %602 = vmatmul.f32.gmra.mxu3 %v540_v10 }
 0x1c4   : > { %v513_v11 = vpop.f32.mrf.mxu2 }
 0x1c5   : > { %v514_v12 = vadd.f32 %v742_v2, %v513_v11 }
 0x1c7   : > { %v533_v13 = vmax.f32 %v514_v12, 0.0 }
 0x1c9   : > { %v541_v14 = vadd.f32 %v533_v13, %v1020_v29 }
 0x1cb   : > { %605 = vmatmul.f32.gmra.mxu3 %v541_v14 }
 0x1cc   : > { %v516_v15 = vpop.f32.mrf.mxu2 }
 0x1cd   : > { %v517_v16 = vadd.f32 %v742_v2, %v516_v15 }
 0x1cf   : > { %v534_v17 = vmax.f32 %v517_v16, 0.0 }
 0x1d1   : > { %v542_v18 = vadd.f32 %v534_v17, %v1025_v33 }
 0x1d3   : > { %608 = vmatmul.f32.gmra.mxu3 %v542_v18 }
 0x1d4   : > { %v519_v19 = vpop.f32.mrf.mxu2 }
 0x1d5   : > { %v520_v20 = vadd.f32 %v742_v2, %v519_v19 }
 0x1d7   : > { %v535_v21 = vmax.f32 %v520_v20, 0.0 }
 0x1d9   : > { %v543_v22 = vadd.f32 %v535_v21, %v1042_v41 }
 0x1db   : > { %611 = vmatmul.f32.gmra.mxu3 %v543_v22 }
 0x1dc   : > { %v522_v23 = vpop.f32.mrf.mxu2 }
 0x1dd   : > { %v523_v24 = vadd.f32 %v742_v2, %v522_v23 }
 0x1df   : > { %v536_v25 = vmax.f32 %v523_v24, 0.0 }
 0x1e1   : > { %v544_v26 = vadd.f32 %v536_v25, %v449_v49 }
 0x1e3   : > { %614 = vmatmul.f32.gmra.mxu3 %v544_v26 }
 0x1e4   : > { %v525_v27 = vpop.f32.mrf.mxu2 }
 0x1e5   : > { %v526_v28 = vadd.f32 %v742_v2, %v525_v27 }
 0x1e7   : > { %v537_v29 = vmax.f32 %v526_v28, 0.0 }
 0x1e9   : > { %v545_v30 = vadd.f32 %v537_v29, %v450_v57 }
 0x1eb   : > { %617 = vmatmul.f32.gmra.mxu3 %v545_v30 }
 0x1ec   : > { %v528_v31 = vpop.f32.mrf.mxu2 }
 0x1ed   : > { %v529_v32 = vadd.f32 %v742_v2, %v528_v31 }
 0x1ef   : > { %v538_v33 = vmax.f32 %v529_v32, 0.0 }
 0x1f1   : > { %v546_v34 = vadd.f32 %v538_v33, %v451_v61 }
 0x1f3   : > { %620 = vmatmul.f32.gmra.mxu3 %v546_v34 }
 0x23e   : > { %v600_v36 = vpop.f32.mrf.mxu3 }
 0x23f   : > { %v601_v37 = vadd.f32 %v743_v35, %v600_v36 }
 0x241   : > { %v624_v38 = vmax.f32 %v601_v37, 0.0 }
 0x243   : > { %v632_v39 = vadd.f32 %v624_v38, %v539_v6 }
 0x245   : > { %640 = vst [vmem:[%s1103_s25] sm:$0xff] %v632_v39 }
 0x246   : > { %v603_v40 = vpop.f32.mrf.mxu3 }
 0x247   : > { %v604_v41 = vadd.f32 %v743_v35, %v603_v40 }
 0x249   : > { %v625_v42 = vmax.f32 %v604_v41, 0.0 }
 0x24b   : > { %v633_v43 = vadd.f32 %v625_v42, %v540_v10 }
 0x24d   : > { %641 = vst [vmem:[%s1103_s25 + $0x8] sm:$0xff] %v633_v43 }
 0x24e   : > { %v606_v44 = vpop.f32.mrf.mxu3 }
 0x24f   : > { %v607_v45 = vadd.f32 %v743_v35, %v606_v44 }
 0x251   : > { %v626_v46 = vmax.f32 %v607_v45, 0.0 }
 0x253   : > { %v634_v47 = vadd.f32 %v626_v46, %v541_v14 }
 0x255   : > { %642 = vst [vmem:[%s1103_s25 + $0x10] sm:$0xff] %v634_v47 }
 0x256   : > { %v609_v48 = vpop.f32.mrf.mxu3 }
 0x257   : > { %v610_v49 = vadd.f32 %v743_v35, %v609_v48 }
 0x259   : > { %v627_v50 = vmax.f32 %v610_v49, 0.0 }
 0x25b   : > { %v635_v51 = vadd.f32 %v627_v50, %v542_v18 }
 0x25d   : > { %643 = vst [vmem:[%s1103_s25 + $0x18] sm:$0xff] %v635_v51 }
 0x25e   : > { %v612_v52 = vpop.f32.mrf.mxu3 }
 0x25f   : > { %v613_v53 = vadd.f32 %v743_v35, %v612_v52 }
 0x261   : > { %v628_v54 = vmax.f32 %v613_v53, 0.0 }
 0x263   : > { %v636_v55 = vadd.f32 %v628_v54, %v543_v22 }
 0x265   : > { %644 = vst [vmem:[%s1103_s25 + $0x20] sm:$0xff] %v636_v55 }
 0x266   : > { %v615_v56 = vpop.f32.mrf.mxu3 }
 0x267   : > { %v616_v57 = vadd.f32 %v743_v35, %v615_v56 }
 0x269   : > { %v629_v58 = vmax.f32 %v616_v57, 0.0 }
 0x26b   : > { %v637_v59 = vadd.f32 %v629_v58, %v544_v26 }
 0x26d   : > { %645 = vst [vmem:[%s1103_s25 + $0x28] sm:$0xff] %v637_v59 }
 0x26e   : > { %v618_v60 = vpop.f32.mrf.mxu3 }
 0x26f   : > { %v619_v61 = vadd.f32 %v743_v35, %v618_v60 }
 0x271   : > { %v630_v62 = vmax.f32 %v619_v61, 0.0 }
 0x273   : > { %v638_v63 = vadd.f32 %v630_v62, %v545_v30 }
 0x275   : > { %646 = vst [vmem:[%s1103_s25 + $0x30] sm:$0xff] %v638_v63 }
 0x276   : > { %v621_v0 = vpop.f32.mrf.mxu3 }
 0x277   : > { %v622_v1 = vadd.f32 %v743_v35, %v621_v0 }
 0x279   : > { %v631_v2 = vmax.f32 %v622_v1, 0.0 }
 0x27b   : > { %v639_v3 = vadd.f32 %v631_v2, %v546_v34 }
 0x27d   : > { %647 = vst [vmem:[%s1103_s25 + $0x38] sm:$0xff] %v639_v3 }
 0x27e PF: > { %s17_s24 = sadd.s32 1, %s750_s24  }
 0x27f   : > { %p14_p4 = scmp.ge.s32.totalorder %s17_s24, 6  }
 0x281   :  { %16 = sbr.rel (!%p14_p4) target bundleno = 1 (0x1), region = 80 }

// kernel: _forward.1
= control target key start
LH: loop header
LB: loop body
LE: loop exit
PB: predicated region body
PF: predicated region fallthrough
CT: control target
= control target key end

     0   :  { %s792_s24 = smov 0   ;;  %s1116_s0 = inlined_call_operand.vmem [shape: f32[256,128], index: 0, kind: input, shape index: {}]   ;;  %s1117_s1 = inlined_call_operand.vmem [shape: f32[128,128], index: 1, kind: input, shape index: {}]   ;;  %s1118_s2 = inlined_call_operand.vmem [shape: f32[1,128], index: 2, kind: input, shape index: {}]   ;;  %s1119_s3 = inlined_call_operand.vmem [shape: f32[2,128,128], index: 3, kind: input, shape index: {}]   ;;  %s1120_s4 = inlined_call_operand.vmem [shape: f32[2,1,128], index: 4, kind: input, shape index: {}]   ;;  %s1121_s5 = inlined_call_operand.vmem [shape: f32[128,128], index: 5, kind: input, shape index: {}]   ;;  %s1122_s6 = inlined_call_operand.vmem [shape: f32[1,128], index: 6, kind: input, shape index: {}]   ;;  %s1123_s7 = inlined_call_operand.vmem [shape: f32[256,128], index: 7, kind: output, shape index: {}]  }
   0x1 LB: > { %s704_s25 = sadd.s32 4294967295, %s750_s24   ;;  %p708_p0 = scmp.ge.s32.totalorder %s750_s24, 1  ;;  %s750_s24 = sphi %s792_s24, %s17_s24  }
   0x2   : > { %p238_p1 = scmp.lt.s32.totalorder %s750_s24, 5 }
   0x4   : > { %p239_p2 = pnand %p708_p0, %p238_p1 }
   0x5   : > { %s709_s19 = sshll.u32 (!%p239_p2), %s704_s25, 3 }
   0x6   : > { %242 = sbr.rel (%p239_p2) target bundleno = 638 (0x27e), region = 48  ;;  %p271_p3 = scmp.lt.s32.totalorder (!%p239_p2), %s709_s19, 31 }
   0xb   : > { %v305_v0 = vld [vmem:[%s1117_s1 + $0x78] sm:$0xff]  ;;  %v304_v1 = vld [vmem:[%s1117_s1 + $0x70] sm:$0xff]  ;;  %v303_v2 = vld [vmem:[%s1117_s1 + $0x68] sm:$0xff]  ;;  %s1125_s19 = smov (!%p271_p3, %s709_s19), 31 }
   0xc   : > { %310 = vmatpush.msra.mxu0 %v305_v0  ;;  %v302_v3 = vld [vmem:[%s1117_s1 + $0x60] sm:$0xff]  ;;  %v301_v4 = vld [vmem:[%s1117_s1 + $0x58] sm:$0xff]  ;;  %v300_v5 = vld [vmem:[%s1117_s1 + $0x50] sm:$0xff]  ;;  %s710_s8 = sshll.u32 %s1125_s19, 3 }
   0xd   : > { %v299_v6 = vld [vmem:[%s1117_s1 + $0x48] sm:$0xff]  ;;  %v298_v7 = vld [vmem:[%s1117_s1 + $0x40] sm:$0xff]  ;;  %v297_v8 = vld [vmem:[%s1117_s1 + $0x38] sm:$0xff]  ;;  %s853_s15 = scalar_lea.vmem %s1116_s0, %s710_s8  ;;  %s1103_s25 = scalar_lea.vmem %s1123_s7, %s710_s8 }
   0xe   : > { %311 = vmatpush.msra.mxu0 %v304_v1  ;;  %v296_v9 = vld [vmem:[%s1117_s1 + $0x30] sm:$0xff]  ;;  %v295_v10 = vld [vmem:[%s1117_s1 + $0x28] sm:$0xff]  ;;  %v294_v11 = vld [vmem:[%s1117_s1 + $0x20] sm:$0xff] }
   0xf   : > { %v293_v12 = vld [vmem:[%s1117_s1 + $0x18] sm:$0xff]  ;;  %v292_v13 = vld [vmem:[%s1117_s1 + $0x10] sm:$0xff]  ;;  %v291_v14 = vld [vmem:[%s1117_s1 + $0x8] sm:$0xff] }
  0x10   : > { %312 = vmatpush.msra.mxu0 %v303_v2  ;;  %v290_v15 = vld [vmem:[%s1117_s1] sm:$0xff]  ;;  %v283_v17 = vld [vmem:[%s853_s15 + $0x8] sm:$0xff]  ;;  %v284_v18 = vld [vmem:[%s853_s15 + $0x10] sm:$0xff] }
  0x11   : > { %v282_v16 = vld [vmem:[%s853_s15] sm:$0xff]  ;;  %v285_v19 = vld [vmem:[%s853_s15 + $0x18] sm:$0xff]  ;;  %v389_v21 = vld [vmem:[%s1119_s3 + $0x70] sm:$0xff] }
  0x12   : > { %313 = vmatpush.msra.mxu0 %v302_v3  ;;  %v390_v20 = vld [vmem:[%s1119_s3 + $0x78] sm:$0xff]  ;;  %v388_v22 = vld [vmem:[%s1119_s3 + $0x68] sm:$0xff]  ;;  %v387_v23 = vld [vmem:[%s1119_s3 + $0x60] sm:$0xff] }
  0x13   : > { %395 = vmatpush.msra.mxu1 %v390_v20  ;;  %v286_v24 = vld [vmem:[%s853_s15 + $0x20] sm:$0xff]  ;;  %v386_v25 = vld [vmem:[%s1119_s3 + $0x58] sm:$0xff]  ;;  %v385_v26 = vld [vmem:[%s1119_s3 + $0x50] sm:$0xff] }
  0x14   : > { %314 = vmatpush.msra.mxu0 %v301_v4  ;;  %v384_v27 = vld [vmem:[%s1119_s3 + $0x48] sm:$0xff]  ;;  %v383_v28 = vld [vmem:[%s1119_s3 + $0x40] sm:$0xff]  ;;  %v382_v30 = vld [vmem:[%s1119_s3 + $0x38] sm:$0xff] }
  0x15   : > { %396 = vmatpush.msra.mxu1 %v389_v21  ;;  %v287_v29 = vld [vmem:[%s853_s15 + $0x28] sm:$0xff]  ;;  %v381_v31 = vld [vmem:[%s1119_s3 + $0x30] sm:$0xff]  ;;  %v379_v33 = vld [vmem:[%s1119_s3 + $0x20] sm:$0xff] }
  0x16   : > { %315 = vmatpush.msra.mxu0 %v300_v5  ;;  %v380_v32 = vld [vmem:[%s1119_s3 + $0x28] sm:$0xff]  ;;  %v288_v34 = vld [vmem:[%s853_s15 + $0x30] sm:$0xff]  ;;  %v378_v35 = vld [vmem:[%s1119_s3 + $0x18] sm:$0xff] }
  0x17   : > { %397 = vmatpush.msra.mxu1 %v388_v22  ;;  %v289_v36 = vld [vmem:[%s853_s15 + $0x38] sm:$0xff]  ;;  %v377_v37 = vld [vmem:[%s1119_s3 + $0x10] sm:$0xff]  ;;  %v376_v38 = vld [vmem:[%s1119_s3 + $0x8] sm:$0xff] }
  0x18   : > { %316 = vmatpush.msra.mxu0 %v299_v6  ;;  %v375_v39 = vld [vmem:[%s1119_s3] sm:$0xff]  ;;  %v728_v53 = vld [vmem:[%s1119_s3 + $0xf8] sm:$0xff]  ;;  %v727_v54 = vld [vmem:[%s1119_s3 + $0xf0] sm:$0xff] }
  0x19   : > { %398 = vmatpush.msra.mxu1 %v387_v23  ;;  %v740_v40 = vld [vmem:[%s1118_s2] ss:$0 sm:$0xff]  ;;  %490 = vmatpush.msra.mxu2 %v728_v53  ;;  %v726_v55 = vld [vmem:[%s1119_s3 + $0xe8] sm:$0xff]  ;;  %v724_v60 = vld [vmem:[%s1119_s3 + $0xd8] sm:$0xff] }
  0x1a   : > { %317 = vmatpush.msra.mxu0 %v298_v7  ;;  %v725_v58 = vld [vmem:[%s1119_s3 + $0xe0] sm:$0xff]  ;;  %v723_v61 = vld [vmem:[%s1119_s3 + $0xd0] sm:$0xff]  ;;  %v722_v62 = vld [vmem:[%s1119_s3 + $0xc8] sm:$0xff] }
  0x1b   : > { %399 = vmatpush.msra.mxu1 %v386_v25  ;;  %491 = vmatpush.msra.mxu2 %v727_v54  ;;  %v721_v1 = vld [vmem:[%s1119_s3 + $0xc0] sm:$0xff]  ;;  %v720_v3 = vld [vmem:[%s1119_s3 + $0xb8] sm:$0xff]  ;;  %v719_v4 = vld [vmem:[%s1119_s3 + $0xb0] sm:$0xff] }
  0x1c   : > { %318 = vmatpush.msra.mxu0 %v297_v8  ;;  %v718_v5 = vld [vmem:[%s1119_s3 + $0xa8] sm:$0xff]  ;;  %v717_v8 = vld [vmem:[%s1119_s3 + $0xa0] sm:$0xff] }
  0x1d   : > { %400 = vmatpush.msra.mxu1 %v385_v26  ;;  %492 = vmatpush.msra.mxu2 %v726_v55  ;;  %v568_v54 = vld [vmem:[%s1121_s5 + $0x28] sm:$0xff] }
  0x1e   : > { %319 = vmatpush.msra.mxu0 %v296_v9 }
  0x1f   : > { %401 = vmatpush.msra.mxu1 %v384_v27  ;;  %493 = vmatpush.msra.mxu2 %v725_v58 }
  0x20   : > { %320 = vmatpush.msra.mxu0 %v295_v10 }
  0x21   : > { %402 = vmatpush.msra.mxu1 %v383_v28  ;;  %494 = vmatpush.msra.mxu2 %v724_v60 }
  0x22   : > { %321 = vmatpush.msra.mxu0 %v294_v11 }
  0x23   : > { %403 = vmatpush.msra.mxu1 %v382_v30  ;;  %495 = vmatpush.msra.mxu2 %v723_v61 }
  0x24   : > { %322 = vmatpush.msra.mxu0 %v293_v12 }
  0x25   : > { %404 = vmatpush.msra.mxu1 %v381_v31  ;;  %496 = vmatpush.msra.mxu2 %v722_v62  ;;  %v566_v62 = vld [vmem:[%s1121_s5 + $0x18] sm:$0xff] }
  0x26   : > { %323 = vmatpush.msra.mxu0 %v292_v13  ;;  %v716_v13 = vld [vmem:[%s1119_s3 + $0x98] sm:$0xff] }
  0x27   : > { %405 = vmatpush.msra.mxu1 %v380_v32  ;;  %497 = vmatpush.msra.mxu2 %v721_v1  ;;  %v563_v1 = vld [vmem:[%s1121_s5] sm:$0xff] }
  0x28   : > { %324 = vmatpush.msra.mxu0 %v291_v14  ;;  %v715_v14 = vld [vmem:[%s1119_s3 + $0x90] sm:$0xff] }
  0x29   : > { %406 = vmatpush.msra.mxu1 %v379_v33  ;;  %498 = vmatpush.msra.mxu2 %v720_v3 }
  0x2a   : > { %325 = vmatpush.msra.mxu0 %v290_v15  ;;  %v714_v15 = vld [vmem:[%s1119_s3 + $0x88] sm:$0xff] }
  0x2b   : > { %326 = vmatmul.f32.vlgmr.msra.gmra.mxu0 %v282_v16  ;;  %407 = vmatpush.msra.mxu1 %v378_v35  ;;  %v713_v16 = vld [vmem:[%s1119_s3 + $0x80] sm:$0xff]  ;;  %v577_v35 = vld [vmem:[%s1121_s5 + $0x70] sm:$0xff] }
  0x2c   : > { %499 = vmatpush.msra.mxu2 %v719_v4 }
  0x2d   : > { %408 = vmatpush.msra.mxu1 %v377_v37 }
  0x2e   : > { %500 = vmatpush.msra.mxu2 %v718_v5 }
  0x2f   : > { %409 = vmatpush.msra.mxu1 %v376_v38  ;;  %v576_v38 = vld [vmem:[%s1121_s5 + $0x68] sm:$0xff] }
  0x30   : > { %501 = vmatpush.msra.mxu2 %v717_v8 }
  0x31   : > { %410 = vmatpush.msra.mxu1 %v375_v39 }
  0x32   : > { %502 = vmatpush.msra.mxu2 %v716_v13 }
  0x33   : > { %329 = vmatmul.f32.gmra.mxu0 %v283_v17  ;;  %v741_v17 = vld [vmem:[%s1120_s4] ss:$0 sm:$0xff] }
  0x34   : > { %503 = vmatpush.msra.mxu2 %v715_v14 }
  0x36   : > { %504 = vmatpush.msra.mxu2 %v714_v15 }
  0x38   : > { %505 = vmatpush.msra.mxu2 %v713_v16 }
  0x3b   : > { %332 = vmatmul.f32.gmra.mxu0 %v284_v18 }
  0x43   : > { %335 = vmatmul.f32.gmra.mxu0 %v285_v19 }
  0x4b   : > { %338 = vmatmul.f32.gmra.mxu0 %v286_v24 }
  0x53   : > { %341 = vmatmul.f32.gmra.mxu0 %v287_v29 }
  0x5b   : > { %344 = vmatmul.f32.gmra.mxu0 %v288_v34  ;;  %v578_v34 = vld [vmem:[%s1121_s5 + $0x78] sm:$0xff] }
  0x5c   : > { %583 = vmatpush.msra.mxu3 %v578_v34 }
  0x5e   : > { %584 = vmatpush.msra.mxu3 %v577_v35  ;;  %v743_v35 = vld [vmem:[%s1122_s6] ss:$0 sm:$0xff] }
  0x60   : > { %585 = vmatpush.msra.mxu3 %v576_v38 }
  0x63   : > { %347 = vmatmul.f32.gmra.mxu0 %v289_v36 }
  0xa8   : > { %v327_v41 = vpop.f32.mrf.mxu0 }
  0xa9   : > { %v917_v42 = vadd.f32 %v740_v40, %v327_v41 }
  0xab   : > { %v351_v43 = vmax.f32 %v917_v42, 0.0  ;;  %v574_v42 = vld [vmem:[%s1121_s5 + $0x58] sm:$0xff] }
  0xad   : > { %411 = vmatmul.f32.vlgmr.msra.gmra.mxu1 %v351_v43 }
  0xb0   : > { %v330_v44 = vpop.f32.mrf.mxu0 }
  0xb1   : > { %v922_v45 = vadd.f32 %v740_v40, %v330_v44 }
  0xb3   : > { %v352_v46 = vmax.f32 %v922_v45, 0.0 }
  0xb5   : > { %414 = vmatmul.f32.gmra.mxu1 %v352_v46 }
  0xb8   : > { %v333_v47 = vpop.f32.mrf.mxu0 }
  0xb9   : > { %v927_v48 = vadd.f32 %v740_v40, %v333_v47 }
  0xbb   : > { %v353_v49 = vmax.f32 %v927_v48, 0.0  ;;  %v571_v48 = vld [vmem:[%s1121_s5 + $0x40] sm:$0xff] }
  0xbd   : > { %417 = vmatmul.f32.gmra.mxu1 %v353_v49 }
  0xc0   : > { %v336_v50 = vpop.f32.mrf.mxu0 }
  0xc1   : > { %v932_v51 = vadd.f32 %v740_v40, %v336_v50  ;;  %v570_v50 = vld [vmem:[%s1121_s5 + $0x38] sm:$0xff] }
  0xc3   : > { %v354_v52 = vmax.f32 %v932_v51, 0.0  ;;  %v569_v51 = vld [vmem:[%s1121_s5 + $0x30] sm:$0xff] }
  0xc5   : > { %420 = vmatmul.f32.gmra.mxu1 %v354_v52 }
  0xc8   : > { %v339_v56 = vpop.f32.mrf.mxu0 }
  0xc9   : > { %v946_v57 = vadd.f32 %v740_v40, %v339_v56  ;;  %v567_v56 = vld [vmem:[%s1121_s5 + $0x20] sm:$0xff] }
  0xcb   : > { %v355_v59 = vmax.f32 %v946_v57, 0.0 }
  0xcd   : > { %423 = vmatmul.f32.gmra.mxu1 %v355_v59 }
  0xd0   : > { %v342_v63 = vpop.f32.mrf.mxu0 }
  0xd1   : > { %v963_v0 = vadd.f32 %v740_v40, %v342_v63  ;;  %v565_v63 = vld [vmem:[%s1121_s5 + $0x10] sm:$0xff] }
  0xd3   : > { %v356_v2 = vmax.f32 %v963_v0, 0.0  ;;  %v564_v0 = vld [vmem:[%s1121_s5 + $0x8] sm:$0xff] }
  0xd5   : > { %426 = vmatmul.f32.gmra.mxu1 %v356_v2 }
  0xd8   : > { %v345_v6 = vpop.f32.mrf.mxu0 }
  0xd9   : > { %v980_v7 = vadd.f32 %v740_v40, %v345_v6 }
  0xdb   : > { %v357_v9 = vmax.f32 %v980_v7, 0.0 }
  0xdd   : > { %429 = vmatmul.f32.gmra.mxu1 %v357_v9 }
  0xe0   : > { %v348_v10 = vpop.f32.mrf.mxu0 }
  0xe1   : > { %v988_v11 = vadd.f32 %v740_v40, %v348_v10  ;;  %v575_v40 = vld [vmem:[%s1121_s5 + $0x60] sm:$0xff] }
  0xe2   : > { %586 = vmatpush.msra.mxu3 %v575_v40 }
  0xe3   : > { %v358_v12 = vmax.f32 %v988_v11, 0.0 }
  0xe4   : > { %587 = vmatpush.msra.mxu3 %v574_v42 }
  0xe5   : > { %432 = vmatmul.f32.gmra.mxu1 %v358_v12 }
 0x12a   : > { %v412_v18 = vpop.f32.mrf.mxu1 }
 0x12b   : > { %v413_v19 = vadd.f32 %v741_v17, %v412_v18 }
 0x12d   : > { %v436_v20 = vmax.f32 %v413_v19, 0.0 }
 0x12f   : > { %v1010_v21 = vadd.f32 %v436_v20, %v351_v43  ;;  %v573_v43 = vld [vmem:[%s1121_s5 + $0x50] sm:$0xff] }
 0x130   : > { %588 = vmatpush.msra.mxu3 %v573_v43 }
 0x131   : > { %506 = vmatmul.f32.vlgmr.msra.gmra.mxu2 %v1010_v21 }
 0x132   : > { %v415_v22 = vpop.f32.mrf.mxu1 }
 0x133   : > { %v416_v23 = vadd.f32 %v741_v17, %v415_v22 }
 0x135   : > { %v437_v24 = vmax.f32 %v416_v23, 0.0 }
 0x137   : > { %v1015_v25 = vadd.f32 %v437_v24, %v352_v46  ;;  %v572_v46 = vld [vmem:[%s1121_s5 + $0x48] sm:$0xff] }
 0x138   : > { %589 = vmatpush.msra.mxu3 %v572_v46 }
 0x139   : > { %509 = vmatmul.f32.gmra.mxu2 %v1015_v25 }
 0x13a   : > { %v418_v26 = vpop.f32.mrf.mxu1  ;;  %590 = vmatpush.msra.mxu3 %v571_v48 }
 0x13b   : > { %v419_v27 = vadd.f32 %v741_v17, %v418_v26 }
 0x13c   : > { %591 = vmatpush.msra.mxu3 %v570_v50 }
 0x13d   : > { %v438_v28 = vmax.f32 %v419_v27, 0.0 }
 0x13e   : > { %592 = vmatpush.msra.mxu3 %v569_v51 }
 0x13f   : > { %v1020_v29 = vadd.f32 %v438_v28, %v353_v49 }
 0x140   : > { %593 = vmatpush.msra.mxu3 %v568_v54 }
 0x141   : > { %512 = vmatmul.f32.gmra.mxu2 %v1020_v29 }
 0x142   : > { %v421_v30 = vpop.f32.mrf.mxu1  ;;  %594 = vmatpush.msra.mxu3 %v567_v56 }
 0x143   : > { %v422_v31 = vadd.f32 %v741_v17, %v421_v30 }
 0x144   : > { %595 = vmatpush.msra.mxu3 %v566_v62 }
 0x145   : > { %v439_v32 = vmax.f32 %v422_v31, 0.0 }
 0x146   : > { %596 = vmatpush.msra.mxu3 %v565_v63 }
 0x147   : > { %v1025_v33 = vadd.f32 %v439_v32, %v354_v52 }
 0x148   : > { %597 = vmatpush.msra.mxu3 %v564_v0 }
 0x149   : > { %515 = vmatmul.f32.gmra.mxu2 %v1025_v33 }
 0x14a   : > { %v424_v36 = vpop.f32.mrf.mxu1  ;;  %598 = vmatpush.msra.mxu3 %v563_v1 }
 0x14b   : > { %v425_v37 = vadd.f32 %v741_v17, %v424_v36 }
 0x14d   : > { %v440_v39 = vmax.f32 %v425_v37, 0.0 }
 0x14f   : > { %v1042_v41 = vadd.f32 %v440_v39, %v355_v59 }
 0x151   : > { %518 = vmatmul.f32.gmra.mxu2 %v1042_v41 }
 0x152   : > { %v427_v44 = vpop.f32.mrf.mxu1 }
 0x153   : > { %v428_v45 = vadd.f32 %v741_v17, %v427_v44 }
 0x155   : > { %v441_v47 = vmax.f32 %v428_v45, 0.0 }
 0x157   : > { %v449_v49 = vadd.f32 %v441_v47, %v356_v2  ;;  %v742_v2 = vld [vmem:[%s1120_s4 + $0x1] ss:$0 sm:$0xff] }
 0x159   : > { %521 = vmatmul.f32.gmra.mxu2 %v449_v49 }
 0x15a   : > { %v430_v52 = vpop.f32.mrf.mxu1 }
 0x15b   : > { %v431_v53 = vadd.f32 %v741_v17, %v430_v52 }
 0x15d   : > { %v442_v55 = vmax.f32 %v431_v53, 0.0 }
 0x15f   : > { %v450_v57 = vadd.f32 %v442_v55, %v357_v9 }
 0x161   : > { %524 = vmatmul.f32.gmra.mxu2 %v450_v57 }
 0x162   : > { %v433_v58 = vpop.f32.mrf.mxu1 }
 0x163   : > { %v434_v59 = vadd.f32 %v741_v17, %v433_v58 }
 0x165   : > { %v443_v60 = vmax.f32 %v434_v59, 0.0 }
 0x167   : > { %v451_v61 = vadd.f32 %v443_v60, %v358_v12 }
 0x169   : > { %527 = vmatmul.f32.gmra.mxu2 %v451_v61 }
 0x1b4   : > { %v507_v3 = vpop.f32.mrf.mxu2 }
 0x1b5   : > { %v508_v4 = vadd.f32 %v742_v2, %v507_v3 }
 0x1b7   : > { %v531_v5 = vmax.f32 %v508_v4, 0.0 }
 0x1b9   : > { %v539_v6 = vadd.f32 %v531_v5, %v1010_v21 }
 0x1bb   : > { %599 = vmatmul.f32.vlgmr.msra.gmra.mxu3 %v539_v6 }
 0x1bc   : > { %v510_v7 = vpop.f32.mrf.mxu2 }
 0x1bd   : > { %v511_v8 = vadd.f32 %v742_v2, %v510_v7 }
 0x1bf   : > { %v532_v9 = vmax.f32 %v511_v8, 0.0 }
 0x1c1   : > { %v540_v10 = vadd.f32 %v532_v9, %v1015_v25 }
 0x1c3   : > { %602 = vmatmul.f32.gmra.mxu3 %v540_v10 }
 0x1c4   : > { %v513_v11 = vpop.f32.mrf.mxu2 }
 0x1c5   : > { %v514_v12 = vadd.f32 %v742_v2, %v513_v11 }
 0x1c7   : > { %v533_v13 = vmax.f32 %v514_v12, 0.0 }
 0x1c9   : > { %v541_v14 = vadd.f32 %v533_v13, %v1020_v29 }
 0x1cb   : > { %605 = vmatmul.f32.gmra.mxu3 %v541_v14 }
 0x1cc   : > { %v516_v15 = vpop.f32.mrf.mxu2 }
 0x1cd   : > { %v517_v16 = vadd.f32 %v742_v2, %v516_v15 }
 0x1cf   : > { %v534_v17 = vmax.f32 %v517_v16, 0.0 }
 0x1d1   : > { %v542_v18 = vadd.f32 %v534_v17, %v1025_v33 }
 0x1d3   : > { %608 = vmatmul.f32.gmra.mxu3 %v542_v18 }
 0x1d4   : > { %v519_v19 = vpop.f32.mrf.mxu2 }
 0x1d5   : > { %v520_v20 = vadd.f32 %v742_v2, %v519_v19 }
 0x1d7   : > { %v535_v21 = vmax.f32 %v520_v20, 0.0 }
 0x1d9   : > { %v543_v22 = vadd.f32 %v535_v21, %v1042_v41 }
 0x1db   : > { %611 = vmatmul.f32.gmra.mxu3 %v543_v22 }
 0x1dc   : > { %v522_v23 = vpop.f32.mrf.mxu2 }
 0x1dd   : > { %v523_v24 = vadd.f32 %v742_v2, %v522_v23 }
 0x1df   : > { %v536_v25 = vmax.f32 %v523_v24, 0.0 }
 0x1e1   : > { %v544_v26 = vadd.f32 %v536_v25, %v449_v49 }
 0x1e3   : > { %614 = vmatmul.f32.gmra.mxu3 %v544_v26 }
 0x1e4   : > { %v525_v27 = vpop.f32.mrf.mxu2 }
 0x1e5   : > { %v526_v28 = vadd.f32 %v742_v2, %v525_v27 }
 0x1e7   : > { %v537_v29 = vmax.f32 %v526_v28, 0.0 }
 0x1e9   : > { %v545_v30 = vadd.f32 %v537_v29, %v450_v57 }
 0x1eb   : > { %617 = vmatmul.f32.gmra.mxu3 %v545_v30 }
 0x1ec   : > { %v528_v31 = vpop.f32.mrf.mxu2 }
 0x1ed   : > { %v529_v32 = vadd.f32 %v742_v2, %v528_v31 }
 0x1ef   : > { %v538_v33 = vmax.f32 %v529_v32, 0.0 }
 0x1f1   : > { %v546_v34 = vadd.f32 %v538_v33, %v451_v61 }
 0x1f3   : > { %620 = vmatmul.f32.gmra.mxu3 %v546_v34 }
 0x23e   : > { %v600_v36 = vpop.f32.mrf.mxu3 }
 0x23f   : > { %v601_v37 = vadd.f32 %v743_v35, %v600_v36 }
 0x241   : > { %v624_v38 = vmax.f32 %v601_v37, 0.0 }
 0x243   : > { %v632_v39 = vadd.f32 %v624_v38, %v539_v6 }
 0x245   : > { %640 = vst [vmem:[%s1103_s25] sm:$0xff] %v632_v39 }
 0x246   : > { %v603_v40 = vpop.f32.mrf.mxu3 }
 0x247   : > { %v604_v41 = vadd.f32 %v743_v35, %v603_v40 }
 0x249   : > { %v625_v42 = vmax.f32 %v604_v41, 0.0 }
 0x24b   : > { %v633_v43 = vadd.f32 %v625_v42, %v540_v10 }
 0x24d   : > { %641 = vst [vmem:[%s1103_s25 + $0x8] sm:$0xff] %v633_v43 }
 0x24e   : > { %v606_v44 = vpop.f32.mrf.mxu3 }
 0x24f   : > { %v607_v45 = vadd.f32 %v743_v35, %v606_v44 }
 0x251   : > { %v626_v46 = vmax.f32 %v607_v45, 0.0 }
 0x253   : > { %v634_v47 = vadd.f32 %v626_v46, %v541_v14 }
 0x255   : > { %642 = vst [vmem:[%s1103_s25 + $0x10] sm:$0xff] %v634_v47 }
 0x256   : > { %v609_v48 = vpop.f32.mrf.mxu3 }
 0x257   : > { %v610_v49 = vadd.f32 %v743_v35, %v609_v48 }
 0x259   : > { %v627_v50 = vmax.f32 %v610_v49, 0.0 }
 0x25b   : > { %v635_v51 = vadd.f32 %v627_v50, %v542_v18 }
 0x25d   : > { %643 = vst [vmem:[%s1103_s25 + $0x18] sm:$0xff] %v635_v51 }
 0x25e   : > { %v612_v52 = vpop.f32.mrf.mxu3 }
 0x25f   : > { %v613_v53 = vadd.f32 %v743_v35, %v612_v52 }
 0x261   : > { %v628_v54 = vmax.f32 %v613_v53, 0.0 }
 0x263   : > { %v636_v55 = vadd.f32 %v628_v54, %v543_v22 }
 0x265   : > { %644 = vst [vmem:[%s1103_s25 + $0x20] sm:$0xff] %v636_v55 }
 0x266   : > { %v615_v56 = vpop.f32.mrf.mxu3 }
 0x267   : > { %v616_v57 = vadd.f32 %v743_v35, %v615_v56 }
 0x269   : > { %v629_v58 = vmax.f32 %v616_v57, 0.0 }
 0x26b   : > { %v637_v59 = vadd.f32 %v629_v58, %v544_v26 }
 0x26d   : > { %645 = vst [vmem:[%s1103_s25 + $0x28] sm:$0xff] %v637_v59 }
 0x26e   : > { %v618_v60 = vpop.f32.mrf.mxu3 }
 0x26f   : > { %v619_v61 = vadd.f32 %v743_v35, %v618_v60 }
 0x271   : > { %v630_v62 = vmax.f32 %v619_v61, 0.0 }
 0x273   : > { %v638_v63 = vadd.f32 %v630_v62, %v545_v30 }
 0x275   : > { %646 = vst [vmem:[%s1103_s25 + $0x30] sm:$0xff] %v638_v63 }
 0x276   : > { %v621_v0 = vpop.f32.mrf.mxu3 }
 0x277   : > { %v622_v1 = vadd.f32 %v743_v35, %v621_v0 }
 0x279   : > { %v631_v2 = vmax.f32 %v622_v1, 0.0 }
 0x27b   : > { %v639_v3 = vadd.f32 %v631_v2, %v546_v34 }
 0x27d   : > { %647 = vst [vmem:[%s1103_s25 + $0x38] sm:$0xff] %v639_v3 }
 0x27e PF: > { %s17_s24 = sadd.s32 1, %s750_s24  }
 0x27f   : > { %p14_p4 = scmp.ge.s32.totalorder %s17_s24, 6  }
 0x281   :  { %16 = sbr.rel (!%p14_p4) target bundleno = 1 (0x1), region = 80 }

</bundles_post_ra>
